<compile_context>
chip_gen: v7x
topology: tpu7x:2x2x1
jax: 0.10.0
libtpu: 0.0.40
codegen_flags: <defaults>
</compile_context>

<pallas_src>
import functools

import jax
import jax.numpy as jnp
from jax import lax
from jax.experimental import pallas as pl
from jax.experimental.pallas import tpu as pltpu


def _round_up(x, m):
    return (x + m - 1) // m * m


def _focal_loss_kernel(x_ref, t_ref, a_ref, loss_ref, *, gamma, n_total,
                       tile_n):
    # x_ref:    (tile_n, C) logits block in VMEM (HBM dtype, e.g. bf16/f32)
    # t_ref:    (tile_n, 1) int32 class indices
    # a_ref:    (tile_n, 1) f32 per-row alpha[target] (pre-gathered in wrapper)
    # loss_ref: (tile_n, 1) f32 per-row focal loss (this tile's output slice)
    i = pl.program_id(0)

    x = x_ref[...].astype(jnp.float32)               # (tile_n, C)
    tn, c = x.shape
    t = t_ref[...]                                   # (tile_n, 1) int32
    alpha = a_ref[...]                               # (tile_n, 1) f32

    # Target-class logit via a lane-iota compare used exactly once
    # (no f32 one-hot matrix is materialized).
    col = lax.broadcasted_iota(jnp.int32, (tn, c), 1)
    x_t = jnp.sum(jnp.where(col == t, x, 0.0), axis=1, keepdims=True)

    # log-softmax of the target class, computed directly (no full P matrix).
    m = jnp.max(x, axis=1, keepdims=True)            # (tile_n, 1)
    lse = jnp.log(jnp.sum(jnp.exp(x - m), axis=1, keepdims=True))
    log_prob = (x_t - m) - lse                       # finite, no log(0)
    prob = jnp.exp(log_prob)

    one_minus = 1.0 - prob
    if isinstance(gamma, int):
        focal = lax.integer_pow(one_minus, gamma)    # VPU multiplies, no EUP
    else:
        focal = jnp.power(one_minus, jnp.float32(gamma))
    loss = -alpha * focal * log_prob                 # (tile_n, 1)

    # Zero rows past the true batch size (garbage rows of a partial block).
    # Pallas also masks the out-of-bounds store, this is belt-and-braces.
    row = lax.broadcasted_iota(jnp.int32, (tn, 1), 0)
    valid = (i * tile_n + row) < n_total
    loss_ref[...] = jnp.where(valid, loss, 0.0)


def focal_loss(logits, target, alpha=None, gamma=2, size_average=True,
               tile_n=None):
    """logits: (N, C) float, target: (N,) int. Returns scalar focal loss."""
    n, c = logits.shape
    dtype = logits.dtype
    itemsize = jnp.dtype(dtype).itemsize

    target = jnp.asarray(target, dtype=jnp.int32)
    t2d = target.reshape(n, 1)

    # PyTorch module defaults alpha to torch.ones((C, 1)); it is gathered by
    # target.  Hoist that gather to the wrapper (tiny XLA op) so the kernel
    # only sees a per-row column.
    if alpha is None:
        alpha_t = jnp.ones((n, 1), dtype=jnp.float32)
    else:
        alpha_vec = jnp.asarray(alpha, dtype=jnp.float32).reshape(-1)
        alpha_t = alpha_vec[target].reshape(n, 1)

    # --- per-generation VMEM budget --------------------------------------
    try:
        vmem_phys = int(pltpu.get_tpu_info().vmem_capacity_bytes)
    except Exception:
        vmem_phys = 128 << 20                       # v5e/v6e default
    vmem_cap = max(vmem_phys - (16 << 20), 16 << 20)   # leave compiler headroom
    # Target logits-block size: ~4 MiB on 128 MiB parts, ~2 MiB on v7x (64 MiB).
    target_block_bytes = (4 << 20) if vmem_phys >= (96 << 20) else (2 << 20)

    # --- batch tile sizing -------------------------------------------------
    if tile_n is None:
        tile_n = max(target_block_bytes // max(c * itemsize, 1), 8)
    tile_n = int(tile_n)
    if tile_n >= n:
        tile_n = n                   # single block; full-dim block is always legal
    else:
        tile_n = max(8, (tile_n // 8) * 8)   # sublane multiple
    grid = (pl.cdiv(n, tile_n),)

    # Explicit scoped-VMEM limit: double-buffered inputs/outputs plus the
    # kernel's f32 temporaries (x upcast, x-m, exp(x-m) ~ 3-4x tile_n*C*4 B).
    io_block_bytes = tile_n * c * itemsize + 3 * tile_n * 4
    temp_bytes = 4 * tile_n * c * 4
    vmem_limit = int(min(max(2 * io_block_bytes + temp_bytes + (4 << 20),
                             16 << 20), vmem_cap))

    kernel = functools.partial(_focal_loss_kernel, gamma=gamma,
                               n_total=n, tile_n=tile_n)

    per_row_loss = pl.pallas_call(
        kernel,
        out_shape=jax.ShapeDtypeStruct((n, 1), jnp.float32),
        grid=grid,
        in_specs=[
            pl.BlockSpec((tile_n, c), lambda i: (i, 0)),   # logits tile (true C)
            pl.BlockSpec((tile_n, 1), lambda i: (i, 0)),   # target column
            pl.BlockSpec((tile_n, 1), lambda i: (i, 0)),   # alpha[target] column
        ],
        out_specs=pl.BlockSpec((tile_n, 1), lambda i: (i, 0)),
        compiler_params=pltpu.CompilerParams(
            dimension_semantics=("parallel",),             # megacore on v7x
            vmem_limit_bytes=vmem_limit),
        cost_estimate=pl.CostEstimate(
            flops=6 * n * c + 12 * n,
            transcendentals=n * c + 2 * n,
            bytes_accessed=n * c * itemsize + 3 * n * 4),
    )(logits, t2d, alpha_t)

    # Final reduction is a trivial XLA op in the wrapper (keeps the grid axis
    # truly parallel instead of a serialized SMEM accumulator).
    return (jnp.mean(per_row_loss) if size_average
            else jnp.sum(per_row_loss))


def _focal_loss_ref(logits, target, alpha=None, gamma=2, size_average=True):
    # pure-JAX reference mirroring the PyTorch forward
    n, c = logits.shape
    x = logits.astype(jnp.float32)
    p = jax.nn.softmax(x, axis=1)
    mask = jax.nn.one_hot(target, c, dtype=jnp.float32)
    if alpha is None:
        alpha_vec = jnp.ones((c,), dtype=jnp.float32)
    else:
        alpha_vec = jnp.asarray(alpha, dtype=jnp.float32).reshape(-1)
    a = alpha_vec[target].reshape(n, 1)
    prob = jnp.sum(p * mask, axis=1, keepdims=True)
    loss = -a * jnp.power(1.0 - prob, float(gamma)) * jnp.log(prob)
    return jnp.mean(loss) if size_average else jnp.sum(loss)


if __name__ == "__main__":
    key = jax.random.PRNGKey(0)
    k1, k2, k3 = jax.random.split(key, 3)
    N, C = 50, 32          # N not a multiple of the tile, C below a full lane
    logits = jax.random.normal(k1, (N, C), dtype=jnp.float32)
    target = jax.random.randint(k2, (N,), 0, C, dtype=jnp.int32)

    # default alpha, mean reduction; forced small tile exercises a multi-step
    # parallel grid and the partial-tile row masking
    out = focal_loss(logits, target, alpha=None, gamma=2, size_average=True,
                     tile_n=16)
    out = jax.block_until_ready(out)
    ref = _focal_loss_ref(logits, target, alpha=None, gamma=2,
                          size_average=True)
    assert jnp.allclose(out, ref, rtol=1e-5, atol=1e-5), (out, ref)

    # custom per-class alpha, sum reduction; auto tile sizing (tile_n -> N,
    # single full-dim block)
    alpha = jax.random.uniform(k3, (C,), minval=0.25, maxval=2.0,
                               dtype=jnp.float32)
    out2 = focal_loss(logits, target, alpha=alpha, gamma=2,
                      size_average=False)
    out2 = jax.block_until_ready(out2)
    ref2 = _focal_loss_ref(logits, target, alpha=alpha, gamma=2,
                           size_average=False)
    assert jnp.allclose(out2, ref2, rtol=1e-5, atol=1e-4), (out2, ref2)

    print("KERNEL_OK")
</pallas_src>

<mosaic_0001>
module attributes {stable_mosaic.version = 11 : i64} {
  func.func @_focal_loss_kernel(%arg0: i32, %arg1: memref<16x32xf32, #tpu.memory_space<vmem>>, %arg2: memref<16x1xi32, #tpu.memory_space<vmem>>, %arg3: memref<16x1xf32, #tpu.memory_space<vmem>>, %arg4: memref<16x1xf32, #tpu.memory_space<vmem>>) attributes {dimension_semantics = [#tpu.dimension_semantics<parallel>], iteration_bounds = array<i64: 4>, scalar_prefetch = 0 : i64, scratch_operands = 0 : i64, tpu.core_type = #tpu.core_type<tc>, window_params = [{transform_indices = @transform_0, window_bounds = array<i64: 16, 32>}, {transform_indices = @transform_1, window_bounds = array<i64: 16, 1>}, {transform_indices = @transform_2, window_bounds = array<i64: 16, 1>}, {transform_indices = @transform_3, window_bounds = array<i64: 16, 1>}]} {
    %c0 = arith.constant 0 : index
    %c0_0 = arith.constant 0 : index
    %0 = vector.load %arg1[%c0, %c0_0] : memref<16x32xf32, #tpu.memory_space<vmem>>, vector<16x32xf32>
    %c0_1 = arith.constant 0 : index
    %c0_2 = arith.constant 0 : index
    %1 = vector.load %arg2[%c0_1, %c0_2] : memref<16x1xi32, #tpu.memory_space<vmem>>, vector<16x1xi32>
    %c0_3 = arith.constant 0 : index
    %c0_4 = arith.constant 0 : index
    %2 = vector.load %arg3[%c0_3, %c0_4] : memref<16x1xf32, #tpu.memory_space<vmem>>, vector<16x1xf32>
    %3 = tpu.iota {dimensions = array<i32: 1>} : vector<16x32xi32>
    %4 = vector.broadcast %1 : vector<16x1xi32> to vector<16x32xi32>
    %5 = arith.cmpi eq, %3, %4 : vector<16x32xi32>
    %cst = arith.constant 0.000000e+00 : f32
    %6 = vector.broadcast %cst : f32 to vector<16x32xf32>
    %7 = arith.select %5, %0, %6 : vector<16x32xi1>, vector<16x32xf32>
    %cst_5 = arith.constant dense<0.000000e+00> : vector<16xf32>
    %8 = vector.multi_reduction <add>, %7, %cst_5 [1] : vector<16x32xf32> to vector<16xf32>
    %9 = vector.shape_cast %8 : vector<16xf32> to vector<16x1xf32>
    %cst_6 = arith.constant dense<0xFF800000> : vector<16xf32>
    %10 = vector.multi_reduction <maximumf>, %0, %cst_6 [1] : vector<16x32xf32> to vector<16xf32>
    %11 = vector.shape_cast %10 : vector<16xf32> to vector<16x1xf32>
    %12 = vector.broadcast %11 : vector<16x1xf32> to vector<16x32xf32>
    %13 = arith.subf %0, %12 : vector<16x32xf32>
    %14 = math.exp %13 : vector<16x32xf32>
    %cst_7 = arith.constant dense<0.000000e+00> : vector<16xf32>
    %15 = vector.multi_reduction <add>, %14, %cst_7 [1] : vector<16x32xf32> to vector<16xf32>
    %16 = vector.shape_cast %15 : vector<16xf32> to vector<16x1xf32>
    %17 = math.log %16 : vector<16x1xf32>
    %18 = arith.subf %9, %11 : vector<16x1xf32>
    %19 = arith.subf %18, %17 : vector<16x1xf32>
    %20 = math.exp %19 : vector<16x1xf32>
    %cst_8 = arith.constant 1.000000e+00 : f32
    %21 = vector.broadcast %cst_8 : f32 to vector<16x1xf32>
    %22 = arith.subf %21, %20 : vector<16x1xf32>
    %23 = arith.mulf %22, %22 : vector<16x1xf32>
    %cst_9 = arith.constant 0.000000e+00 : f32
    %24 = vector.broadcast %cst_9 : f32 to vector<16x1xf32>
    %25 = arith.subf %24, %2 : vector<16x1xf32>
    %26 = arith.mulf %25, %23 : vector<16x1xf32>
    %27 = arith.mulf %26, %19 : vector<16x1xf32>
    %28 = tpu.iota {dimensions = array<i32: 0>} : vector<16x1xi32>
    %c16_i32 = arith.constant 16 : i32
    %29 = arith.muli %arg0, %c16_i32 : i32
    %30 = vector.broadcast %29 : i32 to vector<16x1xi32>
    %31 = arith.addi %30, %28 : vector<16x1xi32>
    %c50_i32 = arith.constant 50 : i32
    %32 = vector.broadcast %c50_i32 : i32 to vector<16x1xi32>
    %33 = arith.cmpi slt, %31, %32 : vector<16x1xi32>
    %cst_10 = arith.constant 0.000000e+00 : f32
    %34 = vector.broadcast %cst_10 : f32 to vector<16x1xf32>
    %35 = arith.select %33, %27, %34 : vector<16x1xi1>, vector<16x1xf32>
    %c0_11 = arith.constant 0 : index
    %c0_12 = arith.constant 0 : index
    %36 = vector.load %arg4[%c0_11, %c0_12] : memref<16x1xf32, #tpu.memory_space<vmem>>, vector<16x1xf32>
    tpu.vector_store %arg4[%c0_11, %c0_12], %35 {strides = array<i32>} : memref<16x1xf32, #tpu.memory_space<vmem>>, vector<16x1xf32>,
    return
  }
  func.func @transform_0(%arg0: i32) -> (i32, i32) {
    %c0_i32 = arith.constant 0 : i32
    %c0_i32_0 = arith.constant 0 : i32
    return %arg0, %c0_i32 : i32, i32
  }
  func.func @transform_1(%arg0: i32) -> (i32, i32) {
    %c0_i32 = arith.constant 0 : i32
    %c0_i32_0 = arith.constant 0 : i32
    return %arg0, %c0_i32 : i32, i32
  }
  func.func @transform_2(%arg0: i32) -> (i32, i32) {
    %c0_i32 = arith.constant 0 : i32
    %c0_i32_0 = arith.constant 0 : i32
    return %arg0, %c0_i32 : i32, i32
  }
  func.func @transform_3(%arg0: i32) -> (i32, i32) {
    %c0_i32 = arith.constant 0 : i32
    %c0_i32_0 = arith.constant 0 : i32
    return %arg0, %c0_i32 : i32, i32
  }
}

</mosaic_0001>

<bundles_post_ra>
// kernel: tpu_custom_call.1
= control target key start
LH: loop header
LB: loop body
LE: loop exit
PB: predicated region body
PF: predicated region fallthrough
CT: control target
= control target key end

     0   :  { %s842_s12 = smov 0   ;;  %s844_s13 = smov 0   ;;  %s946_s0 = inlined_call_operand.vmem [shape: f32[50,32], index: 0, kind: input, shape index: {}]   ;;  %s947_s1 = inlined_call_operand.vmem [shape: s32[50,1], index: 1, kind: input, shape index: {}]   ;;  %s948_s2 = inlined_call_operand.vmem [shape: f32[50,1], index: 2, kind: input, shape index: {}]   ;;  %s949_s3 = inlined_call_operand.vmem [shape: f32[50,1], index: 3, kind: output, shape index: {}]  }
   0x1   :  { %s846_s14 = smov 0  }
   0x2 LB: > { %s855_s15 = sadd.s32 4294967295, %s787_s14   ;;  %s857_s16 = sadd.s32 1, %s787_s14   ;;  %s787_s14 = sphi %s846_s14, %s953_s14   ;;  %s783_s13 = sphi %s844_s13, %s952_s13   ;;  %s779_s12 = sphi %s842_s12, %s951_s12  }
   0x3   : > { %s95_s17 = ssub.s32 %s787_s14, %s857_s16  ;;  %s98_s18 = sadd.s32 1, %s783_s13 }
   0x4   : > { %p96_p0 = scmp.eq.s32.totalorder %s95_s17, 0  ;;  %p108_p1 = scmp.ne.s32.totalorder %s783_s13, %s779_s12 }
   0x5   : > { %p109_p2 = scmp.eq.s32.totalorder %s855_s15, 3  ;;  %p601_p3 = scmp.ge.s32.totalorder %s787_s14, 1 }
   0x6   : > { %s865_s19 = scalar_select %p96_p0, %s783_s13, %s98_s18  }
   0x7   : > { %p867_p4 = por %p109_p2, %p108_p1  ;;  %p184_p5 = scmp.lt.s32.totalorder %s787_s14, 5 }
   0x9   : > { %p185_p6 = pnand %p601_p3, %p184_p5 }
   0xa   : > { %s872_s21 = sshll.u32 (!%p185_p6), %s855_s15, 1  ;;  %v821_v0 = vmov (!%p185_p6), 0   ;;  %vm294_vm0 = vcmask (!%p185_p6), 261120   ;;  %v282_v11 = vlaneseq (!%p185_p6)  ;;  %s609_s6 = sshll.u32 (!%p185_p6), %s855_s15, 4  ;;  %vm352_vm4 = vcmask (!%p185_p6), 7168  }
   0xb   : > { %188 = sbr.rel (%p185_p6) target bundleno = 415 (0x19f), region = 32  ;;  %p234_p7 = scmp.lt.s32.totalorder (!%p185_p6), %s872_s21, 6  ;;  %719 = vset.pattern.permute.xlu1 (!%p185_p6), %v821_v0  ;;  %720 = vset.pattern.permute.xlu0 (!%p185_p6), %v821_v0  ;;  %v345_v41 = vstv (!%p185_p6), %s609_s6 }
   0xc   : > { %v283_v15 = vand.u32 (!%p185_p6), 127, %v282_v11  ;;  %v342_v40 = vshrl.u32 (!%p185_p6), %v282_v11, 7  ;;  %s226_s7 = sand.u32 (!%p185_p6), 1, %s779_s12  }
   0xd   : > { %s602_s8 = sshll.u32 (!%p185_p6), %s226_s7, 4 }
   0xe   : > { %v343_v46 = vadd.s32 (!%p185_p6), 8, %v342_v40  ;;  %v346_v47 = vadd.s32 (!%p185_p6), %v345_v41, %v342_v40  ;;  %s900_s9 = scalar_lea.vmem (!%p185_p6), [#allocation2], %s602_s8  }
  0x10   : > { %vm348_vm3 = vcmp.lt.s32.totalorder (!%p185_p6), %v346_v47, 50  ;;  %v347_v53 = vadd.s32 (!%p185_p6), %v345_v41, %v343_v46 }
  0x12   : > { %s235_s22 = scalar_select %p234_p7, %s872_s21, 6  ;;  %vm349_vm5 = vcmp.lt.s32.totalorder %v347_v53, 50 }
  0x13   : > { %s363_s10 = ssub.s32 (%p867_p4), 7, %s872_s21  ;;  %s912_s14 = scalar_lea.vmem (%p867_p4), %s949_s3, %s609_s6  }
  0x14   : > { %s876_s23 = sshll.u32 %s235_s22, 3  ;;  %p364_p8 = scmp.lt.s32.totalorder (%p867_p4), %s363_s10, 2 }
  0x15   : > { %s237_s26 = scalar_lea.vmem %s946_s0, %s876_s23  ;;  %s251_s29 = scalar_lea.vmem %s947_s1, %s876_s23 }
  0x16   : > { %v276_v1 = vld [vmem:[%s237_s26] sm:$0xff]  ;;  %v277_v3 = vld [vmem:[%s237_s26 + $0x8] sm:$0xff]  ;;  %s265_s5 = scalar_lea.vmem %s948_s2, %s876_s23 }
  0x17   : > { %v301_v2 = vsel %vm294_vm0, %v276_v1, -inf  ;;  %v278_v4 = vld [vmem:[%s251_s29] sm:$0xff]  ;;  %v304_v5 = vsel %vm294_vm0, %v277_v3, -inf  ;;  %v279_v6 = vld [vmem:[%s251_s29 + $0x8] sm:$0xff] }
  0x18   : > { %302 = vmax.xlane.f32.xlu0 %v301_v2  ;;  %285 = vperm.xlu1 %719, %v278_v4   ;;  %v280_v39 = vld [vmem:[%s265_s5] sm:$0xff]  ;;  %v281_v45 = vld [vmem:[%s265_s5 + $0x8] sm:$0xff] }
  0x19   : > { %v335_v43 = vsub.f32 0.0, %v280_v39  ;;  %v336_v51 = vsub.f32 0.0, %v281_v45 }
  0x1c   : > { %305 = vmax.xlane.f32.xlu0 %v304_v5  ;;  %288 = vperm.xlu1 %719, %v279_v6  }
  0x97   : > { %v286_v14 = vpop.permute.xlu1 %285 }
  0x98   : > { %vm290_vm1 = vcmp.eq.s32.totalorder %v283_v15, %v286_v14 }
  0x99   : > { %v292_v18 = vsel %vm290_vm1, %v276_v1, 0.0 }
  0x9a   : > { %v295_v20 = vsel %vm294_vm0, %v292_v18, 0.0 }
  0x9b   : > { %v289_v16 = vpop.permute.xlu1 %288 }
  0x9c   : > { %vm291_vm2 = vcmp.eq.s32.totalorder %v283_v15, %v289_v16 }
  0x9d   : > { %v293_v22 = vsel %vm291_vm2, %v277_v3, 0.0 }
  0x9e   : > { %v298_v24 = vsel %vm294_vm0, %v293_v22, 0.0 }
  0xa5   : > { %v303_v7 = vpop.xlane.xlu0 %302 }
  0xa6   : > { %v307_v8 = vsub.f32 %v276_v1, %v303_v7 }
  0xa8   : > { %v309_v9 = vmul.f32 1.442695, %v307_v8 }
  0xa9   : > { %v306_v10 = vpop.xlane.xlu0 %305 }
  0xaa   : > { %721 = vpow2.f32 %v309_v9  ;;  %v308_v12 = vsub.f32 %v277_v3, %v306_v10 }
  0xac   : > { %v311_v13 = vmul.f32 1.442695, %v308_v12 }
  0xae   : > { %723 = vpow2.f32 %v311_v13 }
  0xb4   : > { %v722_v17 = vpop.eup %721 }
  0xb5   : > { %v313_v19 = vsel %vm294_vm0, %v722_v17, 0.0 }
  0xb6   : > { %314 = vadd.xlane.f32.xlu0 %v313_v19 }
  0xb8   : > { %v724_v21 = vpop.eup %723 }
  0xb9   : > { %v316_v23 = vsel %vm294_vm0, %v724_v21, 0.0 }
  0xba   : > { %317 = vadd.xlane.f32.xlu1 %v316_v23  ;;  %296 = vadd.xlane.f32.xlu0 %v295_v20 }
  0xbe   : > { %299 = vadd.xlane.f32.xlu0 %v298_v24 }
 0x143   : > { %v315_v25 = vpop.xlane.xlu0 %314 }
 0x144   : > { %725 = vlog2.f32 %v315_v25 }
 0x147   : > { %v318_v26 = vpop.xlane.xlu1 %317  ;;  %v297_v27 = vpop.xlane.xlu0 %296 }
 0x148   : > { %727 = vlog2.f32 %v318_v26  ;;  %v323_v30 = vsub.f32 %v297_v27, %v303_v7 }
 0x14b   : > { %v300_v31 = vpop.xlane.xlu0 %299 }
 0x14c   : > { %v324_v36 = vsub.f32 %v300_v31, %v306_v10 }
 0x14e   : > { %v726_v28 = vpop.eup %725 }
 0x14f   : > { %v320_v29 = vmul.f32 0.6931472, %v726_v28 }
 0x151   : > { %v325_v32 = vsub.f32 %v323_v30, %v320_v29 }
 0x152   : > { %v728_v33 = vpop.eup %727 }
 0x153   : > { %v322_v34 = vmul.f32 0.6931472, %v728_v33  ;;  %v327_v35 = vmul.f32 1.442695, %v325_v32 }
 0x155   : > { %729 = vpow2.f32 %v327_v35  ;;  %v326_v37 = vsub.f32 %v324_v36, %v322_v34 }
 0x157   : > { %v329_v38 = vmul.f32 1.442695, %v326_v37 }
 0x159   : > { %731 = vpow2.f32 %v329_v38 }
 0x15f   : > { %v730_v42 = vpop.eup %729 }
 0x160   : > { %v331_v44 = vsub.f32 1.0, %v730_v42 }
 0x162   : > { %v333_v48 = vmul.f32 %v331_v44, %v331_v44 }
 0x163   : > { %v732_v49 = vpop.eup %731 }
 0x164   : > { %v337_v50 = vmul.f32 %v335_v43, %v333_v48  ;;  %v332_v52 = vsub.f32 1.0, %v732_v49 }
 0x166   : > { %v339_v54 = vmul.f32 %v337_v50, %v325_v32  ;;  %v334_v55 = vmul.f32 %v332_v52, %v332_v52 }
 0x167   : > { %361 = sbr.rel (!%p867_p4) target bundleno = 415 (0x19f), region = 36 }
 0x168   : > { %v350_v56 = vsel %vm348_vm3, %v339_v54, 0.0  ;;  %v338_v57 = vmul.f32 %v336_v51, %v334_v55 }
 0x169   : > { %353 = vst.msk [vmem:[%s900_s9] sm:$0xff] %vm352_vm4, %v350_v56 }
 0x16a   : > { %v340_v58 = vmul.f32 %v338_v57, %v326_v37 }
 0x16c   : > { %v351_v59 = vsel %vm349_vm5, %v340_v58, 0.0 }
 0x16d   : > { %354 = vst.msk [vmem:[%s900_s9 + $0x8] sm:$0xff] %vm352_vm4, %v351_v59 }
 0x16e   : > { %s955_s10 = smov (!%p364_p8, %s363_s10), 2 }
 0x16f   : > { %s612_s17 = sshll.u32 %s955_s10, 7 }
 0x170   : > { %p615_p9 = scmp.eq.s32.totalorder %s612_s17, 0 }
 0x171   : > { %s918_s18 = sshrl.u32 (!%p615_p9), %s955_s10, 1 }
 0x172   : > { %372 = sbr.rel (%p615_p9) target bundleno = 415 (0x19f), region = 40  ;;  %p616_p10 = scmp.le.s32.totalorder (!%p615_p9), %s918_s18, 0 }
 0x179   : > { %542 = sbr.rel (%p616_p10) target bundleno = 394 (0x18a), region = 122  ;;  %s789_s15 = smov (!%p616_p10), %s912_s14  }
 0x17a   : > { %s793_s20 = smov (!%p616_p10), %s900_s9   ;;  %s797_s21 = smov (!%p616_p10), 0  }
 0x17b   : > { %s801_s22 = smov (!%p616_p10), 0  }
 0x180 LB: >> { %v436_v60 = vld [vmem:[%s795_s20] sm:$0xff]  ;;  %v438_v61 = vld [vmem:[%s795_s20 + $0x8] sm:$0xff]  ;;  %s440_s23 = sadd.s32 1, %s799_s21  ;;  %s430_s22 = sadd.s32 1, %s803_s22   ;;  %s803_s22 = sphi %s801_s22, %s430_s22   ;;  %s799_s21 = sphi %s797_s21, %s798_s21   ;;  %s795_s20 = sphi %s793_s20, %s445_s20   ;;  %s791_s15 = sphi %s789_s15, %s446_s15  }
 0x181   : >> { %437 = vst [vmem:[%s791_s15] sm:$0xff] %v436_v60  ;;  %439 = vst [vmem:[%s791_s15 + $0x8] sm:$0xff] %v438_v61  ;;  %p441_p11 = scmp.ge.s32.totalorder %s440_s23, %s918_s18  ;;  %p429_p12 = scmp.ge.s32.totalorder %s430_s22, %s918_s18 }
 0x183   : >> { %s957_s23 = smov (%p441_p11, %s440_s23), 0  ;;  %432 = sbr.rel (!%p429_p12) target bundleno = 384 (0x180), region = 128 }
 0x184   : >> { %s617_s24 = sshll.u32 %s957_s23, 4  ;;  %s798_s21 = smov %s957_s23  }
 0x185   : >> { %s445_s20 = scalar_lea.vmem %s900_s9, %s617_s24 [#allocation2]   ;;  %s446_s15 = scalar_lea.vmem %s912_s14, %s617_s24  }
 0x18a PF: > { %s928_s25 = sand.u32 1, %s955_s10   ;;  %s628_s26 = sshll.u32 %s918_s18, 4 }
 0x18b   : > { %s451_s27 = scalar_lea.vmem %s900_s9, %s628_s26 [#allocation2]   ;;  %s453_s28 = scalar_lea.vmem %s912_s14, %s628_s26  }
 0x18c   : > { %p622_p13 = scmp.le.s32.totalorder %s928_s25, 0 }
 0x18d   : > { %s805_s29 = smov (!%p622_p13), %s453_s28   ;;  %s809_s30 = smov (!%p622_p13), %s451_s27  }
 0x18e   : > { %556 = sbr.rel (%p622_p13) target bundleno = 415 (0x19f), region = 133  ;;  %s813_s4 = smov (!%p622_p13), 0  }
 0x18f   : > { %s817_s5 = smov (!%p622_p13), 0  }
 0x195 LB: >> { %v463_v62 = vld [vmem:[%s811_s30] sm:$0xff]  ;;  %s465_s6 = sadd.s32 1, %s815_s4  ;;  %s457_s5 = sadd.s32 1, %s819_s5   ;;  %s819_s5 = sphi %s817_s5, %s457_s5   ;;  %s815_s4 = sphi %s813_s4, %s814_s4   ;;  %s811_s30 = sphi %s809_s30, %s470_s30   ;;  %s807_s29 = sphi %s805_s29, %s471_s29  }
 0x196   : >> { %464 = vst [vmem:[%s807_s29] sm:$0xff] %v463_v62  ;;  %p466_p0 = scmp.ge.s32.totalorder %s465_s6, %s928_s25  ;;  %p456_p1 = scmp.ge.s32.totalorder %s457_s5, %s928_s25 }
 0x198   : >> { %s959_s6 = smov (%p466_p0, %s465_s6), 0  ;;  %459 = sbr.rel (!%p456_p1) target bundleno = 405 (0x195), region = 139 }
 0x199   : >> { %s623_s7 = sshll.u32 %s959_s6, 3  ;;  %s814_s4 = smov %s959_s6  }
 0x19a   : >> { %s470_s30 = scalar_lea.vmem %s451_s27, %s623_s7 [#allocation2]   ;;  %s471_s29 = scalar_lea.vmem %s453_s28, %s623_s7  }
 0x19f PF: > { %p10_p2 = scmp.ge.s32.totalorder %s857_s16, 6   ;;  %s951_s12 = smov %s783_s13 }
 0x1a0   : > { %s952_s13 = smov %s865_s19  ;;  %s953_s14 = smov %s857_s16 }
 0x1a1   :  { %12 = sbr.rel (!%p10_p2) target bundleno = 2 (0x2), region = 150 }

</bundles_post_ra>
